<compile_context>
chip_gen: v7x
topology: tpu7x:2x2x1
jax: 0.10.0
libtpu: 0.0.40
codegen_flags: <defaults>
</compile_context>

<pallas_src>
import math

import jax
import jax.numpy as jnp
from jax import lax
from jax.experimental import pallas as pl
from jax.experimental.pallas import tpu as pltpu


def _attn_kernel(q_ref, k_ref, v_ref, attn_ref, out_ref):
    # Refs are 2-D (batch dim squeezed by the BlockSpec).
    q = q_ref[...]          # (TQ, D)
    k = k_ref[...]          # (Lk, D)
    v = v_ref[...]          # (Lk, Dv)

    # scores = q @ k^T  -> (TQ, Lk); contract last dim of both so the MXU is
    # fed directly (no in-kernel transpose), accumulate in f32.
    scores = lax.dot_general(
        q, k,
        dimension_numbers=(((1,), (1,)), ((), ())),
        preferred_element_type=jnp.float32,
    )

    # Numerically-stable softmax over the key axis (f32 internals).
    m = jnp.max(scores, axis=-1, keepdims=True)
    e = jnp.exp(scores - m)
    denom = jnp.sum(e, axis=-1, keepdims=True)
    attn = e * pl.reciprocal(denom, approx=False)

    # Dropout (eval mode) == identity.

    attn_ref[...] = attn.astype(attn_ref.dtype)

    # P @ V: feed the MXU in v's dtype (bf16 inputs -> bf16 MXU), f32 accumulate.
    out = jnp.dot(attn.astype(v.dtype), v, preferred_element_type=jnp.float32)
    out_ref[...] = out.astype(out_ref.dtype)


def dot_product_attention(q, k, v, *, tq=256, attn_dtype=None):
    """q: (B, Lq, D), k: (B, Lk, D), v: (B, Lk, Dv) -> (attn, attned_v)."""
    B, Lq, D = q.shape
    Bk, Lk, Dk = k.shape
    Bv, Lv, Dv = v.shape
    assert Dk == D and Lv == Lk and Bk == B and Bv == B

    # Query-tile size: use `tq` when it divides Lq, otherwise fall back to a
    # single full-Lq block (keeps tiny / ragged shapes legal).
    TQ = tq if (Lq % tq == 0) else Lq
    n_q_tiles = Lq // TQ

    attn_dtype = jnp.dtype(attn_dtype) if attn_dtype is not None else jnp.dtype(q.dtype)
    in_itemsize = jnp.dtype(q.dtype).itemsize

    # VMEM budget: double-buffered q / attn / out tiles + resident K/V + an
    # f32 scores/attn working slab, with headroom. Clamp to a range that is
    # safe on v5e/v6e (128 MiB physical) and v7x (64 MiB physical).
    tile_bytes = (
        2 * TQ * D * in_itemsize                        # q double-buffer
        + 2 * Lk * D * in_itemsize                      # k (resident, 2 bufs)
        + 2 * Lk * Dv * in_itemsize                     # v (resident, 2 bufs)
        + 2 * TQ * Lk * attn_dtype.itemsize             # attn out double-buffer
        + 2 * TQ * Dv * in_itemsize                     # attned_v double-buffer
        + 2 * TQ * Lk * 4                               # f32 scores/probs working set
    )
    vmem_limit = int(min(max(2 * tile_bytes, 32 * 1024 * 1024), 56 * 1024 * 1024))

    grid = (B, n_q_tiles)
    return pl.pallas_call(
        _attn_kernel,
        out_shape=(
            jax.ShapeDtypeStruct((B, Lq, Lk), attn_dtype),   # attn
            jax.ShapeDtypeStruct((B, Lq, Dv), q.dtype),      # attned_v
        ),
        grid_spec=pltpu.PrefetchScalarGridSpec(
            num_scalar_prefetch=0,
            grid=grid,
            in_specs=[
                # Leading batch dim squeezed (None) -> kernel refs are 2-D.
                pl.BlockSpec((None, TQ, D), lambda b, i: (b, i, 0)),
                # K / V stay resident across the q-tile axis.
                pl.BlockSpec((None, Lk, D), lambda b, i: (b, 0, 0)),
                pl.BlockSpec((None, Lk, Dv), lambda b, i: (b, 0, 0)),
            ],
            out_specs=[
                pl.BlockSpec((None, TQ, Lk), lambda b, i: (b, i, 0)),
                pl.BlockSpec((None, TQ, Dv), lambda b, i: (b, i, 0)),
            ],
        ),
        compiler_params=pltpu.CompilerParams(
            dimension_semantics=("parallel", "parallel"),
            vmem_limit_bytes=vmem_limit,
        ),
    )(q, k, v)


def _reference(q, k, v):
    scores = jnp.einsum("bqd,bkd->bqk", q, k)
    attn = jax.nn.softmax(scores, axis=-1)
    return attn, jnp.einsum("bqk,bkd->bqd", attn, v)


if __name__ == "__main__":
    key = jax.random.PRNGKey(0)

    # --- Test 1: toy shapes matching the module's generic layout -------------
    kq, kk, kv = jax.random.split(key, 3)
    B, Lq, Lk, D, Dv = 2, 8, 8, 32, 32
    q = jax.random.normal(kq, (B, Lq, D), dtype=jnp.float32)
    k = jax.random.normal(kk, (B, Lk, D), dtype=jnp.float32)
    v = jax.random.normal(kv, (B, Lk, Dv), dtype=jnp.float32)

    attn, attned_v = dot_product_attention(q, k, v)
    jax.block_until_ready((attn, attned_v))

    ref_attn, ref_out = _reference(q, k, v)
    assert jnp.allclose(attn, ref_attn, atol=1e-5, rtol=1e-5)
    assert jnp.allclose(attned_v, ref_out, atol=1e-5, rtol=1e-5)

    # --- Test 2: exercise the tiled q-axis path (2 q-tiles) ------------------
    kq2, kk2, kv2 = jax.random.split(jax.random.PRNGKey(1), 3)
    B2, Lq2, Lk2, D2, Dv2 = 2, 256, 128, 32, 32
    q2 = jax.random.normal(kq2, (B2, Lq2, D2), dtype=jnp.float32)
    k2 = jax.random.normal(kk2, (B2, Lk2, D2), dtype=jnp.float32)
    v2 = jax.random.normal(kv2, (B2, Lk2, Dv2), dtype=jnp.float32)

    attn2, attned_v2 = dot_product_attention(q2, k2, v2, tq=128)
    jax.block_until_ready((attn2, attned_v2))

    ref_attn2, ref_out2 = _reference(q2, k2, v2)
    assert jnp.allclose(attn2, ref_attn2, atol=1e-5, rtol=1e-5)
    assert jnp.allclose(attned_v2, ref_out2, atol=1e-4, rtol=1e-4)

    print("KERNEL_OK")
</pallas_src>

<mosaic_0001>
module attributes {stable_mosaic.version = 11 : i64} {
  func.func @_attn_kernel(%arg0: i32, %arg1: i32, %arg2: memref<1x8x32xf32, #tpu.memory_space<vmem>>, %arg3: memref<1x8x32xf32, #tpu.memory_space<vmem>>, %arg4: memref<1x8x32xf32, #tpu.memory_space<vmem>>, %arg5: memref<1x8x8xf32, #tpu.memory_space<vmem>>, %arg6: memref<1x8x32xf32, #tpu.memory_space<vmem>>) attributes {dimension_semantics = [#tpu.dimension_semantics<parallel>, #tpu.dimension_semantics<parallel>], iteration_bounds = array<i64: 2, 1>, scalar_prefetch = 0 : i64, scratch_operands = 0 : i64, tpu.core_type = #tpu.core_type<tc>, window_params = [{transform_indices = @transform_0, window_bounds = array<i64: 1, 8, 32>}, {transform_indices = @transform_1, window_bounds = array<i64: 1, 8, 32>}, {transform_indices = @transform_2, window_bounds = array<i64: 1, 8, 32>}, {transform_indices = @transform_3, window_bounds = array<i64: 1, 8, 8>}, {transform_indices = @transform_4, window_bounds = array<i64: 1, 8, 32>}]} {
    %c0 = arith.constant 0 : index
    %c0_0 = arith.constant 0 : index
    %c0_1 = arith.constant 0 : index
    %0 = vector.load %arg2[%c0, %c0_0, %c0_1] : memref<1x8x32xf32, #tpu.memory_space<vmem>>, vector<1x8x32xf32>
    %1 = vector.shape_cast %0 : vector<1x8x32xf32> to vector<8x32xf32>
    %c0_2 = arith.constant 0 : index
    %c0_3 = arith.constant 0 : index
    %c0_4 = arith.constant 0 : index
    %2 = vector.load %arg3[%c0_2, %c0_3, %c0_4] : memref<1x8x32xf32, #tpu.memory_space<vmem>>, vector<1x8x32xf32>
    %3 = vector.shape_cast %2 : vector<1x8x32xf32> to vector<8x32xf32>
    %c0_5 = arith.constant 0 : index
    %c0_6 = arith.constant 0 : index
    %c0_7 = arith.constant 0 : index
    %4 = vector.load %arg4[%c0_5, %c0_6, %c0_7] : memref<1x8x32xf32, #tpu.memory_space<vmem>>, vector<1x8x32xf32>
    %5 = vector.shape_cast %4 : vector<1x8x32xf32> to vector<8x32xf32>
    %cst = arith.constant dense<0.000000e+00> : vector<8x8xf32>
    %6 = tpu.matmul %1, %3, %cst {dimension_numbers = #tpu.dot_dimension_numbers<[1], [1], [0], [0], [0, 0, 1, 0], [], []>} : vector<8x32xf32>, vector<8x32xf32>, vector<8x8xf32> -> vector<8x8xf32>
    %cst_8 = arith.constant dense<0xFF800000> : vector<8xf32>
    %7 = vector.multi_reduction <maximumf>, %6, %cst_8 [1] : vector<8x8xf32> to vector<8xf32>
    %8 = vector.shape_cast %7 : vector<8xf32> to vector<8x1xf32>
    %9 = vector.broadcast %8 : vector<8x1xf32> to vector<8x8xf32>
    %10 = arith.subf %6, %9 : vector<8x8xf32>
    %11 = math.exp %10 : vector<8x8xf32>
    %cst_9 = arith.constant dense<0.000000e+00> : vector<8xf32>
    %12 = vector.multi_reduction <add>, %11, %cst_9 [1] : vector<8x8xf32> to vector<8xf32>
    %13 = vector.shape_cast %12 : vector<8xf32> to vector<8x1xf32>
    %14 = tpu.reciprocal %13 : vector<8x1xf32> -> vector<8x1xf32>
    %15 = vector.broadcast %14 : vector<8x1xf32> to vector<8x8xf32>
    %16 = arith.mulf %11, %15 : vector<8x8xf32>
    %c0_10 = arith.constant 0 : index
    %c0_11 = arith.constant 0 : index
    %c0_12 = arith.constant 0 : index
    %17 = vector.load %arg5[%c0_10, %c0_11, %c0_12] : memref<1x8x8xf32, #tpu.memory_space<vmem>>, vector<1x8x8xf32>
    %18 = vector.shape_cast %17 : vector<1x8x8xf32> to vector<8x8xf32>
    %19 = vector.shape_cast %16 : vector<8x8xf32> to vector<1x8x8xf32>
    tpu.vector_store %arg5[%c0_10, %c0_11, %c0_12], %19 {strides = array<i32>} : memref<1x8x8xf32, #tpu.memory_space<vmem>>, vector<1x8x8xf32>,
    %cst_13 = arith.constant dense<0.000000e+00> : vector<8x32xf32>
    %20 = tpu.matmul %16, %5, %cst_13 {dimension_numbers = #tpu.dot_dimension_numbers<[1], [0], [0], [1], [0, 0, 1, 1], [], []>} : vector<8x8xf32>, vector<8x32xf32>, vector<8x32xf32> -> vector<8x32xf32>
    %c0_14 = arith.constant 0 : index
    %c0_15 = arith.constant 0 : index
    %c0_16 = arith.constant 0 : index
    %21 = vector.load %arg6[%c0_14, %c0_15, %c0_16] : memref<1x8x32xf32, #tpu.memory_space<vmem>>, vector<1x8x32xf32>
    %22 = vector.shape_cast %21 : vector<1x8x32xf32> to vector<8x32xf32>
    %23 = vector.shape_cast %20 : vector<8x32xf32> to vector<1x8x32xf32>
    tpu.vector_store %arg6[%c0_14, %c0_15, %c0_16], %23 {strides = array<i32>} : memref<1x8x32xf32, #tpu.memory_space<vmem>>, vector<1x8x32xf32>,
    return
  }
  func.func @transform_0(%arg0: i32, %arg1: i32) -> (i32, i32, i32) {
    %c0_i32 = arith.constant 0 : i32
    %c0_i32_0 = arith.constant 0 : i32
    return %arg0, %arg1, %c0_i32 : i32, i32, i32
  }
  func.func @transform_1(%arg0: i32, %arg1: i32) -> (i32, i32, i32) {
    %c0_i32 = arith.constant 0 : i32
    %c0_i32_0 = arith.constant 0 : i32
    %c0_i32_1 = arith.constant 0 : i32
    return %arg0, %c0_i32, %c0_i32_0 : i32, i32, i32
  }
  func.func @transform_2(%arg0: i32, %arg1: i32) -> (i32, i32, i32) {
    %c0_i32 = arith.constant 0 : i32
    %c0_i32_0 = arith.constant 0 : i32
    %c0_i32_1 = arith.constant 0 : i32
    return %arg0, %c0_i32, %c0_i32_0 : i32, i32, i32
  }
  func.func @transform_3(%arg0: i32, %arg1: i32) -> (i32, i32, i32) {
    %c0_i32 = arith.constant 0 : i32
    %c0_i32_0 = arith.constant 0 : i32
    return %arg0, %arg1, %c0_i32 : i32, i32, i32
  }
  func.func @transform_4(%arg0: i32, %arg1: i32) -> (i32, i32, i32) {
    %c0_i32 = arith.constant 0 : i32
    %c0_i32_0 = arith.constant 0 : i32
    return %arg0, %arg1, %c0_i32 : i32, i32, i32
  }
}

</mosaic_0001>

<bundles_post_ra>
// kernel: tpu_custom_call.1
= control target key start
LH: loop header
LB: loop body
LE: loop exit
PB: predicated region body
PF: predicated region fallthrough
CT: control target
= control target key end

     0   :  { %s1334_s0 = inlined_call_operand.hbm [shape: f32[2,8,32], index: 0, kind: input, shape index: {}]   ;;  %s1335_s1 = inlined_call_operand.hbm [shape: f32[2,8,32], index: 1, kind: input, shape index: {}]   ;;  %s1336_s2 = inlined_call_operand.hbm [shape: f32[2,8,32], index: 2, kind: input, shape index: {}]   ;;  %s1337_s3 = inlined_call_operand.hbm [shape: f32[2,8,8], index: 3, kind: output, shape index: {0}]   ;;  %s1338_s4 = inlined_call_operand.hbm [shape: f32[2,8,32], index: 4, kind: output, shape index: {1}]  }
   0x1   :  { %1347 = sst [smem:[#allocation19_spill]] %s1335_s1 }
   0x2   :  { %10 = vsyncpa [#allocation3], 0 }
   0x3   :  { %12 = vsyncpa [#allocation3 + $0x1], 0 }
   0x4   :  { %13 = vsyncpa [#allocation6], 0 }
   0x5   :  { %15 = vsyncpa [#allocation6 + $0x1], 0 }
   0x6   :  { %16 = vsyncpa [#allocation4], 0 }
   0x7   :  { %18 = vsyncpa [#allocation4 + $0x1], 0 }
   0x8   :  { %19 = vsyncpa [#allocation10], 0 }
   0x9   :  { %21 = vsyncpa [#allocation10 + $0x1], 0  ;;  %s1035_s15 = smov 0   ;;  %s1037_s16 = smov 0  }
   0xa   :  { %s1039_s17 = smov 0   ;;  %s1041_s18 = smov 0  }
   0xb   :  { %s1043_s19 = smov 0   ;;  %s1045_s20 = smov 0  }
   0xc LB: > { %1348 = sst [smem:[#allocation15_spill]] %s997_s19  ;;  %s1066_s21 = sadd.s32 4294967295, %s1001_s20   ;;  %s1001_s20 = sphi %s1045_s20, %s27_s20   ;;  %s997_s19 = sphi %s1043_s19, %s1372_s19   ;;  %s993_s18 = sphi %s1041_s18, %s1371_s18   ;;  %s989_s17 = sphi %s1039_s17, %s1375_s17   ;;  %s985_s16 = sphi %s1037_s16, %s1374_s16   ;;  %s981_s15 = sphi %s1035_s15, %s1373_s15  }
   0xd   : > { %1349 = sst [smem:[#allocation16_spill]] %s1001_s20  ;;  %s672_s22 = sadd.s32 4294967294, %s1001_s20  }
   0xe   : > { %s39_s23 = sadd.s32 1, %s997_s19  ;;  %s48_s24 = sadd.s32 1, %s989_s17 }
   0xf   : > { %p41_p0 = scmp.ge.s32.totalorder %s39_s23, 2  ;;  %p55_p1 = scmp.ne.s32.totalorder %s989_s17, %s985_s16 }
  0x10   : > { %p56_p2 = scmp.eq.s32.totalorder %s1001_s20, 0  ;;  %p61_p3 = scmp.ne.s32.totalorder %s985_s16, %s981_s15 }
  0x11   : > { %s1377_s23 = smov (%p41_p0, %s39_s23), 0  ;;  %p62_p5 = scmp.eq.s32.totalorder %s1066_s21, 0 }
  0x12   : > { %1350 = sst [smem:[#allocation17_spill]] %s1377_s23  ;;  %p1078_p4 = por %p56_p2, %p55_p1 }
  0x13   : > { %s43_s26 = ssub.s32 %s997_s19, %s1377_s23  ;;  %p139_p6 = scmp.eq.s32.totalorder %s1066_s21, 1 }
  0x14   : > { %p46_p7 = scmp.eq.s32.totalorder %s43_s26, 0  ;;  %p1086_p8 = por %p62_p5, %p61_p3 }
  0x15   : > { %p1090_p9 = por %p139_p6, %p55_p1  ;;  %p145_p10 = scmp.eq.s32.totalorder %s672_s22, 1 }
  0x16   : > { %s1352_s27 = scalar_select %p1086_p8, 1, 0 }
  0x17   : > { %s1353_s28 = scalar_select %p1090_p9, 1, 0 }
  0x18   : > { %s1095_s29 = scalar_select %p46_p7, %s989_s17, %s48_s24  }
  0x19   : > { %p1097_p11 = por %p145_p10, %p61_p3  ;;  %p737_p13 = scmp.lt.s32.totalorder %s1001_s20, 2 }
  0x1a   : > { %1354 = sst [smem:[#allocation18_spill]] %s1095_s29  ;;  %s1339_s5 = sand.u32 1, %s989_s17  }
  0x1b   : > { %s1355_s30 = scalar_select %p1097_p11, 1, 0 }
  0x1c   : > { %s1106_s6 = sshll.u32 %s1339_s5, 3  ;;  %s1109_s7 = sshll.u32 %s997_s19, 7 }
  0x1d   : > { %p1113_p0 = pnand %p737_p13, %p1078_p4  ;;  %s212_s9 = sand.u32 1, %s1001_s20  }
  0x1e   : > { %s1357_s1 = sld [smem:[#allocation19_spill]]  ;;  %s216_s13 = scalar_lea.vmem [#allocation5], %s1106_s6 }
  0x1f   : > { %s1356_s8 = scalar_select %p1113_p0, 1, 0 }
  0x20   : > { %s223_s14 = sshll.u32 %s216_s13, 4  ;;  %s1129_s22 = scalar_lea.sflag [#allocation6], %s212_s9  ;;  %s1126_s14 = int_to_ptr.vmem [resolvable:$true] %s223_s14 }
  0x21   : > { %p1135_p4 = pneg %p1113_p0 }
  0x24   : > { %s1122_s12 = scalar_lea.hbm %s1357_s1, %s1109_s7  ;;  %s798_s11 = scalar_lea.hbm %s1357_s1, 256 }
  0x25   : > { %s793_s24 = scalar_lea.hbm %s1122_s12, 128  ;;  %p799_p7 = scmp.lt.u32.totalorder %s1122_s12, %s1357_s1 }
  0x26   : > { %p794_p3 = scmp.ne.s32.totalorder %s1122_s12, %s793_s24  ;;  %p800_p10 = scmp.lt.u32.totalorder %s798_s11, %s793_s24 }
  0x27   : > { %p802_p12 = scmp.lt.u32.totalorder %s793_s24, %s1122_s12 }
  0x28   : > { %p796_p5 = pnand %p1135_p4, %p794_p3  ;;  %p801_p13 = por %p800_p10, %p799_p7 }
  0x2a   : > { %p797_p6 = pneg %p796_p5  ;;  %p803_p1 = por %p802_p12, %p801_p13 }
  0x2c   : > { %p804_p2 = pnand %p803_p1, %p797_p6 }
  0x2e   : > { %807 = shalt.err (!%p804_p2)
}
  0x2f   : > { %s808_s9 = scalar_lea.vmem %s1126_s14, 128  ;;  %s1003_s26 = smov [#allocation5]  }
  0x30   : > { %p809_p3 = scmp.ne.s32.totalorder %s1126_s14, %s808_s9  ;;  %s813_s10 = sshll.u32 %s1003_s26, 4  ;;  %s814_s10 = int_to_ptr.vmem [resolvable:$false] %s813_s10 }
  0x31   : > { %s815_s5 = scalar_lea.vmem %s814_s10, 256  ;;  %p816_p9 = scmp.lt.s32.totalorder %s1126_s14, %s814_s10 }
  0x32   : > { %p811_p5 = pnand %p809_p3, %p1135_p4  ;;  %p817_p8 = scmp.lt.s32.totalorder %s815_s5, %s808_s9 }
  0x34   : > { %p812_p11 = pneg %p811_p5  ;;  %p818_p7 = por %p817_p8, %p816_p9 }
  0x36   : > { %p819_p10 = pnand %p818_p7, %p812_p11 }
  0x38   : > { %822 = shalt.err (!%p819_p10)
}
  0x39   : > { %726 = dma.hbm_to_vmem [thread:$0]  (!%p1113_p0), %s1122_s12, 128, %s1126_s14, %s1129_s22  }
  0x3a   : > { %p1359_p12 = scmp.lt.s32.totalorder %s1001_s20, 3  ;;  %p1360_p1 = scmp.ge.s32.totalorder %s1001_s20, 1 }
  0x3b   : > { %s1171_s9 = scalar_lea.hbm %s1334_s0, %s1109_s7  ;;  %s197_s26 = scalar_lea.vmem [#allocation2], %s1106_s6 }
  0x3c   : > { %p1163_p2 = pnand %p1360_p1, %p1359_p12  ;;  %s205_s10 = sshll.u32 %s197_s26, 4  ;;  %s1174_s10 = int_to_ptr.vmem [resolvable:$true] %s205_s10 }
  0x3d   : > { %s1180_s5 = scalar_lea.hbm %s1336_s2, %s1109_s7  ;;  %s1362_s1 = sand.u32 1, %s989_s17  }
  0x3e   : > { %s1361_s24 = scalar_select %p1163_p2, 1, 0 }
  0x3f   : > { %s194_s23 = scalar_lea.sflag [#allocation3], %s1362_s1  ;;  %s823_s19 = scalar_lea.hbm %s1171_s9, 128 }
  0x40   : > { %p824_p8 = scmp.ne.s32.totalorder %s1171_s9, %s823_s19  ;;  %s828_s29 = scalar_lea.hbm %s1334_s0, 256 }
  0x41   : > { %p829_p6 = scmp.lt.u32.totalorder %s1171_s9, %s1334_s0  ;;  %p830_p13 = scmp.lt.u32.totalorder %s828_s29, %s823_s19 }
  0x42   : > { %p826_p9 = pnand %p824_p8, %p1135_p4  ;;  %p832_p5 = scmp.lt.u32.totalorder %s823_s19, %s1171_s9 }
  0x43   : > { %p831_p3 = por %p830_p13, %p829_p6 }
  0x44   : > { %p827_p11 = pneg %p826_p9 }
  0x45   : > { %p833_p7 = por %p832_p5, %p831_p3 }
  0x47   : > { %p834_p10 = pnand %p833_p7, %p827_p11 }
  0x49   : > { %837 = shalt.err (!%p834_p10)
}
  0x4a   : > { %s838_s1 = scalar_lea.vmem %s1174_s10, 128  ;;  %s1004_s7 = smov [#allocation2]  }
  0x4b   : > { %p839_p12 = scmp.ne.s32.totalorder %s1174_s10, %s838_s1  ;;  %s843_s12 = sshll.u32 %s1004_s7, 4  ;;  %s844_s12 = int_to_ptr.vmem [resolvable:$false] %s843_s12 }
  0x4c   : > { %s845_s20 = scalar_lea.vmem %s844_s12, 256  ;;  %p846_p9 = scmp.lt.s32.totalorder %s1174_s10, %s844_s12 }
  0x4d   : > { %p841_p1 = pnand %p839_p12, %p1135_p4  ;;  %p847_p2 = scmp.lt.s32.totalorder %s845_s20, %s838_s1 }
  0x4f   : > { %p842_p8 = pneg %p841_p1  ;;  %p848_p6 = por %p847_p2, %p846_p9 }
  0x51   : > { %p849_p13 = pnand %p848_p6, %p842_p8 }
  0x53   : > { %852 = shalt.err (!%p849_p13)
}
  0x54   : > { %723 = dma.hbm_to_vmem [thread:$0]  (!%p1113_p0), %s1171_s9, 128, %s1174_s10, %s194_s23  }
  0x55   : > { %s234_s19 = scalar_lea.vmem [#allocation7], %s1106_s6  ;;  %s853_s14 = scalar_lea.hbm %s1180_s5, 128 }
  0x56   : > { %s241_s29 = sshll.u32 %s234_s19, 4  ;;  %p854_p11 = scmp.ne.s32.totalorder %s1180_s5, %s853_s14  ;;  %s242_s29 = int_to_ptr.vmem [resolvable:$true] %s241_s29 }
  0x57   : > { %s858_s26 = scalar_lea.hbm %s1336_s2, 256  ;;  %p859_p5 = scmp.lt.u32.totalorder %s1180_s5, %s1336_s2 }
  0x58   : > { %p856_p2 = pnand %p854_p11, %p1135_p4  ;;  %p860_p7 = scmp.lt.u32.totalorder %s858_s26, %s853_s14 }
  0x59   : > { %p862_p12 = scmp.lt.u32.totalorder %s853_s14, %s1180_s5 }
  0x5a   : > { %p857_p3 = pneg %p856_p2  ;;  %p861_p10 = por %p860_p7, %p859_p5 }
  0x5c   : > { %p863_p1 = por %p862_p12, %p861_p10 }
  0x5e   : > { %p864_p8 = pnand %p863_p1, %p857_p3 }
  0x60   : > { %867 = shalt.err (!%p864_p8)
}
  0x61   : > { %s868_s23 = scalar_lea.vmem %s242_s29, 128  ;;  %s1005_s6 = smov [#allocation7]  }
  0x62   : > { %p869_p9 = scmp.ne.s32.totalorder %s242_s29, %s868_s23  ;;  %s873_s9 = sshll.u32 %s1005_s6, 4  ;;  %s874_s9 = int_to_ptr.vmem [resolvable:$false] %s873_s9 }
  0x63   : > { %s875_s10 = scalar_lea.vmem %s874_s9, 256  ;;  %p876_p11 = scmp.lt.s32.totalorder %s242_s29, %s874_s9 }
  0x64   : > { %p871_p6 = pnand %p869_p9, %p1135_p4  ;;  %p877_p2 = scmp.lt.s32.totalorder %s875_s10, %s868_s23 }
  0x66   : > { %p872_p13 = pneg %p871_p6  ;;  %p878_p0 = por %p877_p2, %p876_p11 }
  0x68   : > { %p879_p5 = pnand %p878_p0, %p872_p13 }
  0x6a   : > { %882 = shalt.err (!%p879_p5)
}
  0x6b   : > { %p1363_p7 = scmp.ne.s32.totalorder %s1356_s8, 0  ;;  %p1364_p3 = scmp.ne.s32.totalorder %s1361_s24, 0 }
  0x6c   : > { %s1227_s25 = sand.u32 (!%p1364_p3), 1, %s985_s16   ;;  %p1365_p0 = scmp.ne.s32.totalorder (!%p1364_p3), %s1352_s27, 0 }
  0x6d   : > { %729 = dma.hbm_to_vmem [thread:$0]  (!%p1363_p7), %s1180_s5, 128, %s242_s29, %s1129_s22  }
  0x6e   : > { %250 = sbr.rel (%p1364_p3) target bundleno = 879 (0x36f), region = 32  ;;  %s1230_s12 = sshll.u32 (!%p1364_p3), %s1227_s25, 3 }
  0x6f   : > { %s253_s20 = scalar_lea.sflag (!%p1364_p3), [#allocation3], %s1227_s25  ;;  %s256_s19 = scalar_lea.vmem (!%p1364_p3), [#allocation2], %s1230_s12 }
  0x75   : > { %964 = dma.done.wait (%p1365_p0), %s253_s20, 128  }
  0x76   : > { %966 = vsyncadd (%p1365_p0), %s253_s20, 4294967168  ;;  %s261_s8 = sand.u32 1, %s1066_s21   ;;  %s265_s24 = scalar_lea.vmem [#allocation5], %s1230_s12 }
  0x77   : > { %s262_s22 = scalar_lea.sflag [#allocation6], %s261_s8 }
  0x78   : > { %968 = dma.done.wait (%p1365_p0), %s262_s22, 256  }
  0x79   : > { %970 = vsyncadd (%p1365_p0), %s262_s22, 4294967040  ;;  %v1006_v0 = vmov 0.0   ;;  %vm1007_vm0 = vmmov 0   ;;  %vm317_vm1 = vcmask 261120   ;;  %v315_v1 = vld [vmem:[%s265_s24] sm:$0xff]  ;;  %v314_v2 = vld [vmem:[%s256_s19] sm:$0xff] }
  0x7a   : > { %700 = vmatprep.subr.mxu0 %v1006_v0  ;;  %702 = vmatprep.mubr.msk.f32.mxu0 %vm1007_vm0, %v1006_v0  ;;  %vm394_vm2 = vcmask 64512   ;;  %s274_s21 = scalar_lea.vmem [#allocation7], %s1230_s12  ;;  %s306_s27 = scalar_lea.vmem [#allocation8], %s1230_s12 }
  0x7b   : > { %705 = vmatprep.subr.mxu1 %v1006_v0  ;;  %707 = vmatprep.mubr.msk.f32.mxu1 %vm1007_vm0, %v1006_v0  ;;  %v316_v11 = vld [vmem:[%s274_s21] sm:$0xff]  ;;  %s692_s5 = sshll.u32 %s993_s18, 7  ;;  %s501_s29 = sshll.u32 %s306_s27, 4  ;;  %s502_s29 = int_to_ptr.vmem [resolvable:$true] %s501_s29 }
  0x7c   : > { %701 = vmatpush3.xpose.msk.msra.mxu0 %vm317_vm1, %v315_v1  ;;  %706 = vmatpush3.msra.mxu1 %v316_v11  ;;  %s1258_s13 = scalar_lea.hbm %s1337_s3, %s692_s5  ;;  %s482_s26 = scalar_lea.sflag [#allocation4], %s1227_s25 }
  0x7d   : > { %s883_s1 = scalar_lea.vmem %s502_s29, 128  ;;  %p1366_p10 = scmp.ne.s32.totalorder %s1353_s28, 0 }
  0x7e   : > { %p884_p4 = scmp.ne.s32.totalorder %s502_s29, %s883_s1  ;;  %s1008_s7 = smov [#allocation8]  }
  0x7f   : > { %703 = vmatmul.mubr.msk.f32.vlgmr.msra.gmra.mrb[0].mxu0 %vm317_vm1, %v314_v2  ;;  %s887_s23 = sshll.u32 %s1008_s7, 4  ;;  %s888_s23 = int_to_ptr.vmem [resolvable:$false] %s887_s23 }
  0x80   : > { %p885_p12 = pnand %p884_p4, %p1366_p10  ;;  %s889_s6 = scalar_lea.vmem %s888_s23, 256 }
  0x81   : > { %p890_p8 = scmp.lt.s32.totalorder %s502_s29, %s888_s23  ;;  %p891_p9 = scmp.lt.s32.totalorder %s889_s6, %s883_s1 }
  0x82   : > { %p886_p1 = pneg %p885_p12 }
  0x83   : > { %p892_p6 = por %p891_p9, %p890_p8 }
  0x85   : > { %p893_p13 = pnand %p892_p6, %p886_p1 }
 0x152   : > { %v390_v3 = vpop.f32.mrb[0].mxu0 }
 0x153   : > { %v704_v4 = vpop.f32.mrb[1].mxu0  ;;  %v395_v5 = vsel %vm394_vm2, %v390_v3, -inf }
 0x154   : > { %396 = vmax.xlane.f32.xlu0 %v395_v5 }
 0x1e1   : > { %v397_v6 = vpop.xlane.xlu0 %396 }
 0x1e2   : > { %v398_v7 = vsub.f32 %v390_v3, %v397_v6 }
 0x1e4   : > { %v399_v8 = vmul.f32 1.442695, %v398_v7 }
 0x1e6   : > { %789 = vpow2.f32 %v399_v8 }
 0x1f0   : > { %v790_v9 = vpop.eup %789 }
 0x1f1   : > { %v401_v10 = vsel %vm394_vm2, %v790_v9, 0.0 }
 0x1f2   : > { %402 = vadd.xlane.f32.xlu0 %v401_v10 }
 0x27f   : > { %v403_v12 = vpop.xlane.xlu0 %402 }
 0x280   : > { %791 = vrcp.f32 %v403_v12 }
 0x28a   : > { %v792_v13 = vpop.eup %791 }
 0x28b   : > { %v405_v14 = vmul.f32 %v792_v13, %v790_v9 }
 0x28d   : > { %708 = vmatmul.mubr.msk.f32.vlgmr.msra.gmra.mrb[0].mxu1 %vm394_vm2, %v405_v14  ;;  %406 = vst.msk [vmem:[%s306_s27] sm:$0xff] %vm394_vm2, %v405_v14 }
 0x28e   : > { %896 = shalt.err (!%p893_p13)
}
 0x28f   : > { %s897_s9 = scalar_lea.hbm %s1258_s13, 128  ;;  %s901_s19 = scalar_lea.hbm %s1337_s3, 256 }
 0x290   : > { %p898_p11 = scmp.ne.s32.totalorder %s1258_s13, %s897_s9  ;;  %p902_p7 = scmp.lt.u32.totalorder %s1258_s13, %s1337_s3 }
 0x291   : > { %p903_p3 = scmp.lt.u32.totalorder %s901_s19, %s897_s9  ;;  %p905_p4 = scmp.lt.u32.totalorder %s897_s9, %s1258_s13 }
 0x292   : > { %p899_p2 = pnand %p898_p11, %p1366_p10 }
 0x293   : > { %p904_p0 = por %p903_p3, %p902_p7 }
 0x294   : > { %p900_p5 = pneg %p899_p2 }
 0x295   : > { %p906_p12 = por %p905_p4, %p904_p0 }
 0x297   : > { %p907_p1 = pnand %p906_p12, %p900_p5 }
 0x299   : > { %910 = shalt.err (!%p907_p1)
}
 0x29a   : > { %716 = dma.vmem_to_hbm [thread:$0]  (%p1366_p10), %s502_s29, 128, %s1258_s13, %s482_s26  }
 0x29b   : > { %s313_s24 = scalar_lea.vmem [#allocation9], %s1230_s12  ;;  %s1284_s11 = scalar_lea.hbm %s1338_s4, %s692_s5 }
 0x29c   : > { %s515_s21 = sshll.u32 %s313_s24, 4  ;;  %s487_s1 = scalar_lea.sflag [#allocation10], %s1227_s25  ;;  %s1286_s21 = int_to_ptr.vmem [resolvable:$true] %s515_s21 }
 0x29d   : > { %s911_s7 = scalar_lea.vmem %s1286_s21, 128  ;;  %s1009_s18 = smov [#allocation9]  }
 0x29e   : > { %p912_p8 = scmp.ne.s32.totalorder %s1286_s21, %s911_s7  ;;  %s915_s12 = sshll.u32 %s1009_s18, 4  ;;  %s916_s12 = int_to_ptr.vmem [resolvable:$false] %s915_s12 }
 0x29f   : > { %s917_s5 = scalar_lea.vmem %s916_s12, 256  ;;  %p918_p13 = scmp.lt.s32.totalorder %s1286_s21, %s916_s12 }
 0x2a0   : > { %p913_p9 = pnand %p912_p8, %p1366_p10  ;;  %p919_p11 = scmp.lt.s32.totalorder %s917_s5, %s911_s7 }
 0x2a2   : > { %p914_p6 = pneg %p913_p9  ;;  %p920_p2 = por %p919_p11, %p918_p13 }
 0x2a4   : > { %p921_p5 = pnand %p920_p2, %p914_p6 }
 0x360   : > { %v476_v15 = vpop.f32.mrb[0].mxu1 }
 0x361   : > { %480 = vst.msk [vmem:[%s313_s24] sm:$0xff] %vm317_vm1, %v476_v15  ;;  %v709_v16 = vpop.f32.mrb[1].mxu1 }
 0x362   : > { %924 = shalt.err (!%p921_p5)
}
 0x363   : > { %s925_s25 = scalar_lea.hbm %s1284_s11, 128  ;;  %s929_s26 = scalar_lea.hbm %s1338_s4, 256 }
 0x364   : > { %p926_p7 = scmp.ne.s32.totalorder %s1284_s11, %s925_s25  ;;  %p930_p4 = scmp.lt.u32.totalorder %s1284_s11, %s1338_s4 }
 0x365   : > { %p931_p12 = scmp.lt.u32.totalorder %s929_s26, %s925_s25  ;;  %p933_p8 = scmp.lt.u32.totalorder %s925_s25, %s1284_s11 }
 0x366   : > { %p927_p3 = pnand %p926_p7, %p1366_p10 }
 0x367   : > { %p932_p1 = por %p931_p12, %p930_p4 }
 0x368   : > { %p928_p0 = pneg %p927_p3 }
 0x369   : > { %p934_p9 = por %p933_p8, %p932_p1 }
 0x36b   : > { %p935_p6 = pnand %p934_p9, %p928_p0 }
 0x36d   : > { %938 = shalt.err (!%p935_p6)
}
 0x36e   : > { %717 = dma.vmem_to_hbm [thread:$0]  (%p1366_p10), %s1286_s21, 128, %s1284_s11, %s487_s1  }
 0x36f PF: > { %s1367_s9 = sld [smem:[#allocation16_spill]]  ;;  %s527_s10 = sand.u32 1, %s981_s15  }
 0x370   : > { %p1368_p13 = scmp.ne.s32.totalorder %s1355_s30, 0  ;;  %s528_s20 = scalar_lea.sflag [#allocation4], %s527_s10 }
 0x375   : > { %p1369_p11 = scmp.ge.s32.totalorder %s1367_s9, 2 }
 0x377   : > { %p731_p2 = pnand %p1369_p11, %p1368_p13 }
 0x379   : > { %972 = dma.done.wait (!%p731_p2), %s528_s20, 128  }
 0x37a   : > { %974 = vsyncadd (!%p731_p2), %s528_s20, 4294967168  ;;  %s537_s19 = scalar_lea.sflag [#allocation10], %s527_s10 }
 0x37b   : > { %976 = dma.done.wait (!%p731_p2), %s537_s19, 128  }
 0x37c   : > { %978 = vsyncadd (!%p731_p2), %s537_s19, 4294967168  ;;  %s27_s20 = sadd.s32 1, %s1367_s9   ;;  %s1370_s28 = sld [smem:[#allocation18_spill]] }
 0x37d   : > { %p24_p5 = scmp.ge.s32.totalorder %s27_s20, 4   ;;  %s1371_s18 = sld [smem:[#allocation15_spill]] }
 0x37e   : > { %s1372_s19 = sld [smem:[#allocation17_spill]]  ;;  %s1373_s15 = smov %s985_s16 }
 0x37f   : > { %s1374_s16 = smov %s989_s17  ;;  %26 = sbr.rel (!%p24_p5) target bundleno = 12 (0xc), region = 118 }
 0x382   : > { %s1375_s17 = smov %s1370_s28 }
 0x386   :  { %542 = vsyncpa [#allocation3], 1 }
 0x387   :  { %544 = vsyncpa [#allocation3 + $0x1], 1 }
 0x388   :  { %545 = vsyncpa [#allocation6], 1 }
 0x389   :  { %547 = vsyncpa [#allocation6 + $0x1], 1 }
 0x38a   :  { %548 = vsyncpa [#allocation4], 1 }
 0x38b   :  { %550 = vsyncpa [#allocation4 + $0x1], 1 }
 0x38c   :  { %551 = vsyncpa [#allocation10], 1 }
 0x38d   :  { %553 = vsyncpa [#allocation10 + $0x1], 1 }

</bundles_post_ra>
